<compile_context>
chip_gen: v5e
topology: v5e:2x2
jax: 0.10.0
libtpu: 0.0.40
codegen_flags: <defaults>
</compile_context>

<pallas_src>
import jax
import jax.numpy as jnp
from jax.experimental import pallas as pl
from jax.experimental.pallas import tpu as pltpu

LANE = 128


def _round_up(v, m):
    return ((v + m - 1) // m) * m


def _vmem_budget_bytes():
    # Generation-aware: ~70% of physical VMEM (v5e/v6e: 128 MiB -> ~90 MiB,
    # v7x: 64 MiB -> ~45 MiB), leaving headroom for compiler scratch/semaphores.
    try:
        cap = int(pltpu.get_tpu_info().vmem_capacity_bytes)
        if cap <= 0:
            cap = 64 << 20
    except Exception:
        cap = 64 << 20  # conservative fallback (v7x per-TensorCore)
    return int(cap * 0.7)


def _layer_vmem_bytes(tn, tk, cin_pad, cout_pad, out_itemsize):
    bf = 2  # bf16 itemsize
    a_bytes = 2 * 2 * tn * tk * bf                 # A1 + A2 tiles, double-buffered
    xk_bytes = 2 * tk * cin_pad * bf               # reduction x tile, double-buffered
    xi_bytes = 2 * tn * cin_pad * bf               # root x tile, double-buffered
    w_bytes = 2 * 3 * cin_pad * cout_pad * bf      # stacked weights (const index map)
    b_bytes = 2 * cout_pad * 4                     # bias
    out_bytes = 2 * tn * cout_pad * out_itemsize   # output tile, double-buffered
    acc_bytes = tn * 3 * cin_pad * 4               # f32 accumulator scratch
    return a_bytes + xk_bytes + xi_bytes + w_bytes + b_bytes + out_bytes + acc_bytes


def _pick_tiles(n_pad, cin_pad, cout_pad, out_itemsize, budget):
    """Largest 128-multiple (tn, tk) that divides n_pad and fits the VMEM budget."""
    cands = [t for t in (1024, 512, 256, 128) if t <= n_pad and n_pad % t == 0]
    if not cands:
        cands = [n_pad]
    best, best_score = (cands[-1], cands[-1]), (-1, -1)
    for tn in cands:
        for tk in cands:
            if _layer_vmem_bytes(tn, tk, cin_pad, cout_pad, out_itemsize) <= budget:
                score = (tn * tk, tk)  # prefer bigger tiles; tie-break longer K
                if score > best_score:
                    best_score, best = score, (tn, tk)
    return best


# ---------------------------------------------------------------------------
# Pallas kernel: one fused SubGraphConv layer + ReLU, K-tiled over adjacency
# columns, f32 VMEM accumulator, single fused weight matmul at finalize.
# ---------------------------------------------------------------------------
def _subgraph_conv_relu_kernel(a1_ref, a2_ref, xk_ref, xi_ref, w_ref, b_ref,
                               o_ref, acc_ref):
    k = pl.program_id(1)
    cin = xk_ref.shape[1]

    @pl.when(k == 0)
    def _init():
        acc_ref[...] = jnp.zeros_like(acc_ref)
        # Root-path features for this row tile live in the first cin columns.
        acc_ref[:, :cin] = xi_ref[...].astype(jnp.float32)

    xk = xk_ref[...]  # (tk, cin_pad) bf16
    # Mean aggregations as partial dense matmuls, accumulated in f32 VMEM.
    acc_ref[:, cin:2 * cin] += jnp.dot(a1_ref[...], xk,
                                       preferred_element_type=jnp.float32)
    acc_ref[:, 2 * cin:] += jnp.dot(a2_ref[...], xk,
                                    preferred_element_type=jnp.float32)

    @pl.when(k == pl.num_programs(1) - 1)
    def _finalize():
        # One fused K = 3*cin_pad matmul against stacked [Wroot; W1; W2].
        feats = acc_ref[...].astype(jnp.bfloat16)
        out = jnp.dot(feats, w_ref[...],
                      preferred_element_type=jnp.float32) + b_ref[...]
        # NodeEncoder applies ReLU after every conv -> fuse it here.
        o_ref[...] = jnp.maximum(out, 0.0).astype(o_ref.dtype)


def _subgraph_conv_relu(h, a1, a2, w_stacked, bias, *, out_dtype, vmem_budget):
    n_pad, cin_pad = h.shape
    cout_pad = w_stacked.shape[1]
    out_itemsize = jnp.dtype(out_dtype).itemsize

    tn, tk = _pick_tiles(n_pad, cin_pad, cout_pad, out_itemsize, vmem_budget)
    grid = (n_pad // tn, n_pad // tk)

    flops = 2 * 2 * n_pad * n_pad * cin_pad + 2 * n_pad * 3 * cin_pad * cout_pad
    bytes_accessed = (2 * 2 * n_pad * n_pad                    # A1 + A2 (bf16)
                      + 2 * (n_pad // tn) * n_pad * cin_pad    # x re-streamed per row tile
                      + 2 * n_pad * cin_pad                    # root x rows
                      + 2 * 3 * cin_pad * cout_pad             # stacked weights
                      + 4 * cout_pad                           # bias
                      + out_itemsize * n_pad * cout_pad)       # output

    return pl.pallas_call(
        _subgraph_conv_relu_kernel,
        out_shape=jax.ShapeDtypeStruct((n_pad, cout_pad), out_dtype),
        grid_spec=pltpu.PrefetchScalarGridSpec(
            num_scalar_prefetch=0,
            grid=grid,
            in_specs=[
                pl.BlockSpec((tn, tk), lambda i, k: (i, k)),                  # A1 tile
                pl.BlockSpec((tn, tk), lambda i, k: (i, k)),                  # A2 tile
                pl.BlockSpec((tk, cin_pad), lambda i, k: (k, 0)),             # x (reduction rows)
                pl.BlockSpec((tn, cin_pad), lambda i, k: (i, 0)),             # x (tile's own rows)
                pl.BlockSpec((3 * cin_pad, cout_pad), lambda i, k: (0, 0)),   # [Wr; W1; W2]
                pl.BlockSpec((1, cout_pad), lambda i, k: (0, 0)),             # bias
            ],
            out_specs=pl.BlockSpec((tn, cout_pad), lambda i, k: (i, 0)),
            scratch_shapes=[pltpu.VMEM((tn, 3 * cin_pad), jnp.float32)],
        ),
        compiler_params=pltpu.CompilerParams(
            dimension_semantics=("parallel", "arbitrary"),
            vmem_limit_bytes=int(vmem_budget),
        ),
        cost_estimate=pl.CostEstimate(
            flops=int(flops), transcendentals=0, bytes_accessed=int(bytes_accessed)),
    )(a1, a2, h, h, w_stacked, bias)


# ---------------------------------------------------------------------------
# JAX wrapper: adjacency build (scatter) + padding + layer loop
# ---------------------------------------------------------------------------
def _build_mean_adjacency(edge_index, n_pad):
    # TODO(synk): the edge_index scatter (adjacency build) is data-dependent
    # scatter with no clean dense-Pallas equivalent; done once here in plain JAX.
    # TODO(synk): for large sparse graphs a CSR / scalar-prefetch gather kernel
    # should replace this dense O(n^2) formulation entirely.
    src = edge_index[0].astype(jnp.int32)
    dst = edge_index[1].astype(jnp.int32)
    ones = jnp.ones(src.shape, jnp.float32)
    m = jnp.zeros((n_pad, n_pad), jnp.float32).at[src, dst].add(ones)  # M[s, t] = #edges s->t
    deg_in = jnp.clip(jnp.sum(m, axis=0), 1.0, None)    # messages arriving at each target
    deg_out = jnp.clip(jnp.sum(m, axis=1), 1.0, None)   # messages arriving at each source
    a1 = m.T / deg_in[:, None]    # out1 = A1 @ h1   (flow source -> target, mean)
    a2 = m / deg_out[:, None]     # out2 = A2 @ h2   (flow target -> source, mean)
    return a1.astype(jnp.bfloat16), a2.astype(jnp.bfloat16)


def node_encoder_forward(x, edge_index, layer_params, subgraph_mask=None):
    if subgraph_mask is not None:
        edge_index = edge_index[:, subgraph_mask]

    n, cin = x.shape
    n_pad = _round_up(max(n, 1), LANE)
    vmem_budget = _vmem_budget_bytes()

    a1, a2 = _build_mean_adjacency(edge_index, n_pad)

    cin_pad = _round_up(cin, LANE)
    # Inter-layer h is kept in bf16 (f32 accumulation in all dots); final layer
    # output stays f32.
    h = jnp.zeros((n_pad, cin_pad), jnp.bfloat16).at[:n, :cin].set(
        x.astype(jnp.bfloat16))

    # TODO(synk): when 2*n_pad^2 (bf16) + weights fit VMEM, all layers could be
    # fused into a single pallas_call (layer grid axis) to avoid re-streaming
    # A1/A2 and the per-layer h HBM roundtrip; kept per-layer here because the
    # first layer has a different cin.
    num_layers = len(layer_params)
    for li, (w1t, w2t, wrt, br) in enumerate(layer_params):
        ci, co = wrt.shape
        ci_pad, co_pad = _round_up(ci, LANE), _round_up(co, LANE)
        # Stack [Wroot; W1; W2] -> single K = 3*ci_pad matmul in the kernel.
        ws = jnp.zeros((3 * ci_pad, co_pad), jnp.float32)
        ws = ws.at[0:ci, :co].set(wrt)
        ws = ws.at[ci_pad:ci_pad + ci, :co].set(w1t)
        ws = ws.at[2 * ci_pad:2 * ci_pad + ci, :co].set(w2t)
        ws = ws.astype(jnp.bfloat16)
        bp = jnp.zeros((1, co_pad), jnp.float32).at[0, :co].set(br)

        out_dtype = jnp.float32 if li == num_layers - 1 else jnp.bfloat16
        h = _subgraph_conv_relu(h, a1, a2, ws, bp,
                                out_dtype=out_dtype, vmem_budget=vmem_budget)

    out_channels = layer_params[-1][2].shape[1]
    return h[:n, :out_channels]


# ---------------------------------------------------------------------------
# Params + pure-JAX reference
# ---------------------------------------------------------------------------
def init_node_encoder_params(key, in_channels, hidden_channels, num_layers=3):
    """Weights stored pre-transposed as (in, out); PyTorch-Linear-like uniform init."""
    layers = []
    ci = in_channels
    for _ in range(num_layers):
        key, k1, k2, k3, k4 = jax.random.split(key, 5)
        bound = 1.0 / (ci ** 0.5)
        w1t = jax.random.uniform(k1, (ci, hidden_channels), jnp.float32, -bound, bound)
        w2t = jax.random.uniform(k2, (ci, hidden_channels), jnp.float32, -bound, bound)
        wrt = jax.random.uniform(k3, (ci, hidden_channels), jnp.float32, -bound, bound)
        br = jax.random.uniform(k4, (hidden_channels,), jnp.float32, -bound, bound)
        layers.append((w1t, w2t, wrt, br))
        ci = hidden_channels
    return layers


def reference_forward(x, edge_index, layer_params, subgraph_mask=None):
    if subgraph_mask is not None:
        edge_index = edge_index[:, subgraph_mask]
    src, dst = edge_index[0], edge_index[1]
    n = x.shape[0]
    hp = jax.lax.Precision.HIGHEST

    def seg_mean(vals, idx):
        s = jnp.zeros((n, vals.shape[1]), jnp.float32).at[idx].add(vals)
        c = jnp.zeros((n,), jnp.float32).at[idx].add(1.0)
        return s / jnp.clip(c, 1.0, None)[:, None]

    h = x.astype(jnp.float32)
    for (w1t, w2t, wrt, br) in layer_params:
        h1 = jnp.dot(h, w1t, precision=hp)
        h2 = jnp.dot(h, w2t, precision=hp)
        out1 = seg_mean(h1[src], dst)   # source -> target, mean aggr
        out2 = seg_mean(h2[dst], src)   # target -> source, mean aggr
        h = jnp.maximum(jnp.dot(h, wrt, precision=hp) + br + out1 + out2, 0.0)
    return h


if __name__ == "__main__":
    key = jax.random.PRNGKey(0)
    kx, ke1, ke2, kp = jax.random.split(key, 4)

    num_nodes, in_channels, hidden_channels, num_edges = 20, 16, 32, 64
    x = jax.random.normal(kx, (num_nodes, in_channels), jnp.float32)
    src = jax.random.randint(ke1, (num_edges,), 0, num_nodes, jnp.int32)
    dst = jax.random.randint(ke2, (num_edges,), 0, num_nodes, jnp.int32)
    edge_index = jnp.stack([src, dst], axis=0)

    layer_params = init_node_encoder_params(kp, in_channels, hidden_channels, num_layers=3)

    out = node_encoder_forward(x, edge_index, layer_params)
    out = jax.block_until_ready(out)

    ref = reference_forward(x, edge_index, layer_params)
    assert out.shape == (num_nodes, hidden_channels)

    # bf16 inputs (A, h, weights) with f32 accumulation: check normalized error.
    rel_err = float(jnp.linalg.norm(out - ref) / (jnp.linalg.norm(ref) + 1e-12))
    max_err = float(jnp.max(jnp.abs(out - ref)))
    max_ref = float(jnp.max(jnp.abs(ref)))
    assert rel_err < 2e-2, f"relative error too large: {rel_err}"
    assert max_err < 5e-2 * (1.0 + max_ref), f"max abs error too large: {max_err}"

    print("KERNEL_OK")
</pallas_src>

<mosaic_0001>
module attributes {stable_mosaic.version = 11 : i64} {
  func.func @_subgraph_conv_relu_kernel(%arg0: i32, %arg1: i32, %arg2: memref<128x128xbf16, #tpu.memory_space<vmem>>, %arg3: memref<128x128xbf16, #tpu.memory_space<vmem>>, %arg4: memref<128x128xbf16, #tpu.memory_space<vmem>>, %arg5: memref<128x128xbf16, #tpu.memory_space<vmem>>, %arg6: memref<384x128xbf16, #tpu.memory_space<vmem>>, %arg7: memref<1x128xf32, #tpu.memory_space<vmem>>, %arg8: memref<128x128xbf16, #tpu.memory_space<vmem>>, %arg9: memref<128x384xf32, #tpu.memory_space<vmem>>) attributes {dimension_semantics = [#tpu.dimension_semantics<parallel>, #tpu.dimension_semantics<arbitrary>], iteration_bounds = array<i64: 1, 1>, scalar_prefetch = 0 : i64, scratch_operands = 1 : i64, tpu.core_type = #tpu.core_type<tc>, window_params = [{transform_indices = @transform_0, window_bounds = array<i64: 128, 128>}, {transform_indices = @transform_1, window_bounds = array<i64: 128, 128>}, {transform_indices = @transform_2, window_bounds = array<i64: 128, 128>}, {transform_indices = @transform_3, window_bounds = array<i64: 128, 128>}, {pipeline_mode = #tpu.pipeline_mode<synchronous>, transform_indices = @transform_4, window_bounds = array<i64: 384, 128>}, {pipeline_mode = #tpu.pipeline_mode<synchronous>, transform_indices = @transform_5, window_bounds = array<i64: 1, 128>}, {transform_indices = @transform_6, window_bounds = array<i64: 128, 128>}]} {
    %c0_i32 = arith.constant 0 : i32
    %0 = arith.cmpi eq, %arg1, %c0_i32 : i32
    %1 = arith.extui %0 : i1 to i32
    %c0_i32_0 = arith.constant 0 : i32
    %2 = arith.cmpi ne, %1, %c0_i32_0 : i32
    scf.if %2 {
      %cst_15 = arith.constant 0.000000e+00 : f32
      %17 = vector.broadcast %cst_15 : f32 to vector<128x384xf32>
      %c0_16 = arith.constant 0 : index
      %c0_17 = arith.constant 0 : index
      %18 = vector.load %arg9[%c0_16, %c0_17] : memref<128x384xf32, #tpu.memory_space<vmem>>, vector<128x384xf32>
      tpu.vector_store %arg9[%c0_16, %c0_17], %17 {strides = array<i32>} : memref<128x384xf32, #tpu.memory_space<vmem>>, vector<128x384xf32>,
      %c0_18 = arith.constant 0 : index
      %c0_19 = arith.constant 0 : index
      %19 = vector.load %arg5[%c0_18, %c0_19] : memref<128x128xbf16, #tpu.memory_space<vmem>>, vector<128x128xbf16>
      %20 = arith.extf %19 : vector<128x128xbf16> to vector<128x128xf32>
      %c0_20 = arith.constant 0 : index
      %c0_21 = arith.constant 0 : index
      %21 = vector.load %arg9[%c0_20, %c0_21] : memref<128x384xf32, #tpu.memory_space<vmem>>, vector<128x128xf32>
      tpu.vector_store %arg9[%c0_20, %c0_21], %20 {strides = array<i32>} : memref<128x384xf32, #tpu.memory_space<vmem>>, vector<128x128xf32>,
    } else {
    }
    %c0 = arith.constant 0 : index
    %c0_1 = arith.constant 0 : index
    %3 = vector.load %arg4[%c0, %c0_1] : memref<128x128xbf16, #tpu.memory_space<vmem>>, vector<128x128xbf16>
    %c0_2 = arith.constant 0 : index
    %c128 = arith.constant 128 : index
    %4 = vector.load %arg9[%c0_2, %c128] : memref<128x384xf32, #tpu.memory_space<vmem>>, vector<128x128xf32>
    %c0_3 = arith.constant 0 : index
    %c0_4 = arith.constant 0 : index
    %5 = vector.load %arg2[%c0_3, %c0_4] : memref<128x128xbf16, #tpu.memory_space<vmem>>, vector<128x128xbf16>
    %cst = arith.constant dense<0.000000e+00> : vector<128x128xf32>
    %6 = tpu.matmul %5, %3, %cst {dimension_numbers = #tpu.dot_dimension_numbers<[1], [0], [0], [1], [0, 0, 1, 1], [], []>} : vector<128x128xbf16>, vector<128x128xbf16>, vector<128x128xf32> -> vector<128x128xf32>
    %7 = arith.addf %4, %6 : vector<128x128xf32>
    %c0_5 = arith.constant 0 : index
    %c128_6 = arith.constant 128 : index
    %8 = vector.load %arg9[%c0_5, %c128_6] : memref<128x384xf32, #tpu.memory_space<vmem>>, vector<128x128xf32>
    tpu.vector_store %arg9[%c0_5, %c128_6], %7 {strides = array<i32>} : memref<128x384xf32, #tpu.memory_space<vmem>>, vector<128x128xf32>,
    %c0_7 = arith.constant 0 : index
    %c256 = arith.constant 256 : index
    %9 = vector.load %arg9[%c0_7, %c256] : memref<128x384xf32, #tpu.memory_space<vmem>>, vector<128x128xf32>
    %c0_8 = arith.constant 0 : index
    %c0_9 = arith.constant 0 : index
    %10 = vector.load %arg3[%c0_8, %c0_9] : memref<128x128xbf16, #tpu.memory_space<vmem>>, vector<128x128xbf16>
    %cst_10 = arith.constant dense<0.000000e+00> : vector<128x128xf32>
    %11 = tpu.matmul %10, %3, %cst_10 {dimension_numbers = #tpu.dot_dimension_numbers<[1], [0], [0], [1], [0, 0, 1, 1], [], []>} : vector<128x128xbf16>, vector<128x128xbf16>, vector<128x128xf32> -> vector<128x128xf32>
    %12 = arith.addf %9, %11 : vector<128x128xf32>
    %c0_11 = arith.constant 0 : index
    %c256_12 = arith.constant 256 : index
    %13 = vector.load %arg9[%c0_11, %c256_12] : memref<128x384xf32, #tpu.memory_space<vmem>>, vector<128x128xf32>
    tpu.vector_store %arg9[%c0_11, %c256_12], %12 {strides = array<i32>} : memref<128x384xf32, #tpu.memory_space<vmem>>, vector<128x128xf32>,
    %c0_i32_13 = arith.constant 0 : i32
    %14 = arith.cmpi eq, %arg1, %c0_i32_13 : i32
    %15 = arith.extui %14 : i1 to i32
    %c0_i32_14 = arith.constant 0 : i32
    %16 = arith.cmpi ne, %15, %c0_i32_14 : i32
    scf.if %16 {
      %c0_15 = arith.constant 0 : index
      %c0_16 = arith.constant 0 : index
      %17 = vector.load %arg9[%c0_15, %c0_16] : memref<128x384xf32, #tpu.memory_space<vmem>>, vector<128x384xf32>
      %18 = arith.truncf %17 : vector<128x384xf32> to vector<128x384xbf16>
      %c0_17 = arith.constant 0 : index
      %c0_18 = arith.constant 0 : index
      %19 = vector.load %arg6[%c0_17, %c0_18] : memref<384x128xbf16, #tpu.memory_space<vmem>>, vector<384x128xbf16>
      %cst_19 = arith.constant dense<0.000000e+00> : vector<128x128xf32>
      %20 = tpu.matmul %18, %19, %cst_19 {dimension_numbers = #tpu.dot_dimension_numbers<[1], [0], [0], [1], [0, 0, 1, 1], [], []>} : vector<128x384xbf16>, vector<384x128xbf16>, vector<128x128xf32> -> vector<128x128xf32>
      %c0_20 = arith.constant 0 : index
      %c0_21 = arith.constant 0 : index
      %21 = vector.load %arg7[%c0_20, %c0_21] : memref<1x128xf32, #tpu.memory_space<vmem>>, vector<1x128xf32>
      %22 = vector.broadcast %21 : vector<1x128xf32> to vector<128x128xf32>
      %23 = arith.addf %20, %22 : vector<128x128xf32>
      %cst_22 = arith.constant 0.000000e+00 : f32
      %24 = vector.broadcast %cst_22 : f32 to vector<128x128xf32>
      %25 = arith.maximumf %23, %24 : vector<128x128xf32>
      %26 = arith.truncf %25 : vector<128x128xf32> to vector<128x128xbf16>
      %c0_23 = arith.constant 0 : index
      %c0_24 = arith.constant 0 : index
      %27 = vector.load %arg8[%c0_23, %c0_24] : memref<128x128xbf16, #tpu.memory_space<vmem>>, vector<128x128xbf16>
      tpu.vector_store %arg8[%c0_23, %c0_24], %26 {strides = array<i32>} : memref<128x128xbf16, #tpu.memory_space<vmem>>, vector<128x128xbf16>,
    } else {
    }
    return
  }
  func.func @transform_0(%arg0: i32, %arg1: i32) -> (i32, i32) {
    %c0_i32 = arith.constant 0 : i32
    return %arg0, %arg1 : i32, i32
  }
  func.func @transform_1(%arg0: i32, %arg1: i32) -> (i32, i32) {
    %c0_i32 = arith.constant 0 : i32
    return %arg0, %arg1 : i32, i32
  }
  func.func @transform_2(%arg0: i32, %arg1: i32) -> (i32, i32) {
    %c0_i32 = arith.constant 0 : i32
    %c0_i32_0 = arith.constant 0 : i32
    return %arg1, %c0_i32 : i32, i32
  }
  func.func @transform_3(%arg0: i32, %arg1: i32) -> (i32, i32) {
    %c0_i32 = arith.constant 0 : i32
    %c0_i32_0 = arith.constant 0 : i32
    return %arg0, %c0_i32 : i32, i32
  }
  func.func @transform_4(%arg0: i32, %arg1: i32) -> (i32, i32) {
    %c0_i32 = arith.constant 0 : i32
    %c0_i32_0 = arith.constant 0 : i32
    %c0_i32_1 = arith.constant 0 : i32
    return %c0_i32, %c0_i32_0 : i32, i32
  }
  func.func @transform_5(%arg0: i32, %arg1: i32) -> (i32, i32) {
    %c0_i32 = arith.constant 0 : i32
    %c0_i32_0 = arith.constant 0 : i32
    %c0_i32_1 = arith.constant 0 : i32
    return %c0_i32, %c0_i32_0 : i32, i32
  }
  func.func @transform_6(%arg0: i32, %arg1: i32) -> (i32, i32) {
    %c0_i32 = arith.constant 0 : i32
    %c0_i32_0 = arith.constant 0 : i32
    return %arg0, %c0_i32 : i32, i32
  }
}

</mosaic_0001>

<bundles_post_ra>
// kernel: tpu_custom_call.1
= control target key start
LH: loop header
LB: loop body
LE: loop exit
PB: predicated region body
PF: predicated region fallthrough
CT: control target
= control target key end

     0   :  { %11 = vsyncpa [#allocation4], 0  ;;  %s1686_s0 = inlined_call_operand.hbm [shape: bf16[128,128], index: 0, kind: input, shape index: {}]   ;;  %s1687_s1 = inlined_call_operand.hbm [shape: bf16[128,128], index: 1, kind: input, shape index: {}]   ;;  %s1688_s2 = inlined_call_operand.hbm [shape: bf16[128,128], index: 2, kind: input, shape index: {}]   ;;  %s1689_s3 = inlined_call_operand.hbm [shape: bf16[128,128], index: 3, kind: input, shape index: {}]   ;;  %s1690_s4 = inlined_call_operand.hbm [shape: bf16[384,128], index: 4, kind: input, shape index: {}]   ;;  %s1691_s5 = inlined_call_operand.vmem [shape: f32[1,128], index: 5, kind: input, shape index: {}]   ;;  %s1692_s6 = inlined_call_operand.hbm [shape: bf16[128,128], index: 6, kind: output, shape index: {}]  }
   0x1   :  { %12 = vsyncpa [#allocation7], 0 }
   0x2   :  { %13 = vsyncpa [#allocation10], 0 }
   0x3   :  { %14 = vsyncpa [#allocation5], 0  ;;  %s32_s23 = sshll.u32 %s1687_s1, 4  ;;  %s1586_s24 = smov [#allocation6]   ;;  %s33_s23 = int_to_ptr.hbm [resolvable:$true] %s32_s23 }
   0x4   :  { %s34_s25 = sshll.u32 %s1586_s24, 4  ;;  %s58_s28 = sshll.u32 %s1689_s3, 4  ;;  %s35_s25 = int_to_ptr.vmem [resolvable:$true] %s34_s25  ;;  %s59_s28 = int_to_ptr.hbm [resolvable:$true] %s58_s28 }
   0x5   :  { %s1587_s29 = smov 64   ;;  %s1588_s30 = smov 4  }
   0x6   :  { %40 = dma.hbm_to_vmem [thread:$0]  %s33_s23, 1024, %s35_s25, [#allocation7], %s1587_s29, %s1587_s29, %s1588_s30  }
   0x7   :  { %s1589_s7 = smov [#allocation9]   ;;  %s19_s1 = sshll.u32 %s1686_s0, 4  ;;  %s20_s1 = int_to_ptr.hbm [resolvable:$true] %s19_s1 }
   0x8   :  { %s60_s8 = sshll.u32 %s1589_s7, 4  ;;  %s45_s12 = sshll.u32 %s1688_s2, 4  ;;  %s61_s8 = int_to_ptr.vmem [resolvable:$true] %s60_s8  ;;  %s46_s12 = int_to_ptr.hbm [resolvable:$true] %s45_s12 }
   0x9   :  { %66 = dma.hbm_to_vmem [thread:$0]  %s59_s28, 1024, %s61_s8, [#allocation10], %s1587_s29, %s1587_s29, %s1588_s30  }
   0xa   :  { %s1590_s13 = smov [#allocation3]   ;;  %s1591_s15 = smov [#allocation8]  }
   0xb   :  { %s21_s14 = sshll.u32 %s1590_s13, 4  ;;  %s47_s0 = sshll.u32 %s1591_s15, 4  ;;  %s22_s14 = int_to_ptr.vmem [resolvable:$true] %s21_s14  ;;  %s48_s0 = int_to_ptr.vmem [resolvable:$true] %s47_s0 }
   0xc   :  { %27 = dma.hbm_to_vmem [thread:$0]  %s20_s1, 1024, %s22_s14, [#allocation4], %s1587_s29, %s1587_s29, %s1588_s30  }
   0xd   :  { %s71_s18 = sshll.u32 %s1690_s4, 4  ;;  %s1592_s2 = smov [#allocation11]   ;;  %s72_s18 = int_to_ptr.hbm [resolvable:$true] %s71_s18 }
   0xe   :  { %53 = dma.hbm_to_vmem [thread:$0]  %s46_s12, 1024, %s48_s0, [#allocation7], %s1587_s29, %s1587_s29, %s1588_s30  }
   0xf   :  { %s73_s19 = sshll.u32 %s1592_s2, 4  ;;  %s74_s19 = int_to_ptr.vmem [resolvable:$true] %s73_s19 }
  0x10   :  { %79 = dma.hbm_to_vmem [thread:$0]  %s72_s18, 3072, %s74_s19, [#allocation10], %s1587_s29, %s1587_s29, %s1588_s30  }
  0x11   :  { %1578 = dma.done.wait [#allocation4], 1024  }
  0x12   :  { %1579 = vsyncadd [#allocation4], 4294966272 }
  0x13   :  { %1580 = dma.done.wait [#allocation7], 2048  }
  0x14   :  { %1581 = vsyncadd [#allocation7], 4294965248 }
  0x15   :  { %1582 = dma.done.wait [#allocation10], 4096  }
  0x16   :  { %1583 = vsyncadd [#allocation10], 4294963200  ;;  %v1274_v0 = vld [vmem:[#allocation8 + $0x38] sm:$0xff]  ;;  %v1273_v1 = vld [vmem:[#allocation8 + $0x30] sm:$0xff]  ;;  %s1060_s24 = sshll.u32 %s1692_s6, 4  ;;  %s1061_s24 = int_to_ptr.hbm [resolvable:$true] %s1060_s24 }
  0x17   :  { %346 = vmatpush.bf16.msra.mxu0 %v1274_v0  ;;  %1401 = vmatpush.bf16.msra.mxu1 %v1274_v0  ;;  %v1272_v2 = vld [vmem:[#allocation8 + $0x28] sm:$0xff]  ;;  %v1271_v3 = vld [vmem:[#allocation8 + $0x20] sm:$0xff]  ;;  %v1270_v4 = vld [vmem:[#allocation8 + $0x18] sm:$0xff] }
  0x18   :  { %1402 = vmatpush.bf16.msra.mxu2 %v1274_v0  ;;  %1403 = vmatpush.bf16.msra.mxu3 %v1274_v0  ;;  %v1269_v5 = vld [vmem:[#allocation8 + $0x10] sm:$0xff]  ;;  %v1268_v6 = vld [vmem:[#allocation8 + $0x8] sm:$0xff]  ;;  %v1267_v7 = vld [vmem:[#allocation8] sm:$0xff] }
  0x19   :  { %v1275_v8 = vld [vmem:[#allocation3] sm:$0xff]  ;;  %v1277_v9 = vld [vmem:[#allocation3 + $0x10] sm:$0xff]  ;;  %v1276_v10 = vld [vmem:[#allocation3 + $0x8] sm:$0xff] }
  0x1a   :  { %v1278_v11 = vld [vmem:[#allocation3 + $0x18] sm:$0xff]  ;;  %v1283_v12 = vld [vmem:[#allocation6] sm:$0xff]  ;;  %v1284_v14 = vld [vmem:[#allocation6 + $0x8] sm:$0xff] }
  0x1b   :  { %347 = vmatpush.bf16.msra.mxu0 %v1273_v1  ;;  %1404 = vmatpush.bf16.msra.mxu1 %v1273_v1  ;;  %v1279_v13 = vld [vmem:[#allocation3 + $0x20] sm:$0xff]  ;;  %v1280_v15 = vld [vmem:[#allocation3 + $0x28] sm:$0xff]  ;;  %v1285_v16 = vld [vmem:[#allocation6 + $0x10] sm:$0xff] }
  0x1c   :  { %1405 = vmatpush.bf16.msra.mxu2 %v1273_v1  ;;  %1406 = vmatpush.bf16.msra.mxu3 %v1273_v1  ;;  %v1281_v17 = vld [vmem:[#allocation3 + $0x30] sm:$0xff]  ;;  %v1298_v18 = vld [vmem:[#allocation11 + $0x38] sm:$0xff]  ;;  %v1296_v22 = vld [vmem:[#allocation11 + $0x28] sm:$0xff] }
  0x1d   :  { %v1306_v19 = vld [vmem:[#allocation11 + $0x78] sm:$0xff]  ;;  %v1297_v20 = vld [vmem:[#allocation11 + $0x30] sm:$0xff]  ;;  %v1304_v24 = vld [vmem:[#allocation11 + $0x68] sm:$0xff] }
  0x1e   :  { %v1305_v21 = vld [vmem:[#allocation11 + $0x70] sm:$0xff]  ;;  %v1286_v23 = vld [vmem:[#allocation6 + $0x18] sm:$0xff]  ;;  %v1295_v26 = vld [vmem:[#allocation11 + $0x20] sm:$0xff] }
  0x1f   :  { %348 = vmatpush.bf16.msra.mxu0 %v1272_v2  ;;  %1407 = vmatpush.bf16.msra.mxu1 %v1272_v2  ;;  %v1282_v25 = vld [vmem:[#allocation3 + $0x38] sm:$0xff]  ;;  %v1303_v27 = vld [vmem:[#allocation11 + $0x60] sm:$0xff]  ;;  %v1293_v30 = vld [vmem:[#allocation11 + $0x10] sm:$0xff] }
  0x20   :  { %1408 = vmatpush.bf16.msra.mxu2 %v1272_v2  ;;  %1409 = vmatpush.bf16.msra.mxu3 %v1272_v2  ;;  %v1294_v28 = vld [vmem:[#allocation11 + $0x18] sm:$0xff]  ;;  %v1301_v31 = vld [vmem:[#allocation11 + $0x50] sm:$0xff]  ;;  %v1287_v32 = vld [vmem:[#allocation6 + $0x20] sm:$0xff] }
  0x21   :  { %v1302_v29 = vld [vmem:[#allocation11 + $0x58] sm:$0xff]  ;;  %v1292_v33 = vld [vmem:[#allocation11 + $0x8] sm:$0xff]  ;;  %v1291_v35 = vld [vmem:[#allocation11] sm:$0xff] }
  0x22   :  { %v1300_v34 = vld [vmem:[#allocation11 + $0x48] sm:$0xff]  ;;  %v1299_v36 = vld [vmem:[#allocation11 + $0x40] sm:$0xff]  ;;  %v1314_v38 = vld [vmem:[#allocation11 + $0xb8] sm:$0xff] }
  0x23   :  { %349 = vmatpush.bf16.msra.mxu0 %v1271_v3  ;;  %1410 = vmatpush.bf16.msra.mxu1 %v1271_v3  ;;  %v1316_v37 = vld [vmem:[#allocation9] sm:$0xff]   ;;  %v1313_v39 = vld [vmem:[#allocation11 + $0xb0] sm:$0xff]  ;;  %v1288_v40 = vld [vmem:[#allocation6 + $0x28] sm:$0xff] }
  0x24   :  { %1411 = vmatpush.bf16.msra.mxu2 %v1271_v3  ;;  %1412 = vmatpush.bf16.msra.mxu3 %v1271_v3  ;;  %v1312_v41 = vld [vmem:[#allocation11 + $0xa8] sm:$0xff]  ;;  %v1311_v42 = vld [vmem:[#allocation11 + $0xa0] sm:$0xff]  ;;  %v1310_v44 = vld [vmem:[#allocation11 + $0x98] sm:$0xff] }
  0x25   :  { %v1387_v43 = vld [vmem:[#allocation9 + $0x8] sm:$0xff]   ;;  %v1309_v45 = vld [vmem:[#allocation11 + $0x90] sm:$0xff]  ;;  %v1307_v50 = vld [vmem:[#allocation11 + $0x80] sm:$0xff] }
  0x26   :  { %v1289_v46 = vld [vmem:[#allocation6 + $0x30] sm:$0xff]  ;;  %v1308_v49 = vld [vmem:[#allocation11 + $0x88] sm:$0xff]  ;;  %v1290_v55 = vld [vmem:[#allocation6 + $0x38] sm:$0xff] }
  0x27   :  { %350 = vmatpush.bf16.msra.mxu0 %v1270_v4  ;;  %1413 = vmatpush.bf16.msra.mxu1 %v1270_v4  ;;  %v1388_v53 = vld [vmem:[#allocation9 + $0x10] sm:$0xff]   ;;  %v1389_v60 = vld [vmem:[#allocation9 + $0x18] sm:$0xff]  }
  0x28   :  { %1414 = vmatpush.bf16.msra.mxu2 %v1270_v4  ;;  %1415 = vmatpush.bf16.msra.mxu3 %v1270_v4 }
  0x2b   :  { %351 = vmatpush.bf16.msra.mxu0 %v1269_v5  ;;  %1416 = vmatpush.bf16.msra.mxu1 %v1269_v5 }
  0x2c   :  { %1417 = vmatpush.bf16.msra.mxu2 %v1269_v5  ;;  %1418 = vmatpush.bf16.msra.mxu3 %v1269_v5 }
  0x2f   :  { %352 = vmatpush.bf16.msra.mxu0 %v1268_v6  ;;  %1419 = vmatpush.bf16.msra.mxu1 %v1268_v6 }
  0x30   :  { %1420 = vmatpush.bf16.msra.mxu2 %v1268_v6  ;;  %1421 = vmatpush.bf16.msra.mxu3 %v1268_v6 }
  0x33   :  { %353 = vmatpush.bf16.msra.mxu0 %v1267_v7  ;;  %1422 = vmatpush.bf16.msra.mxu1 %v1267_v7 }
  0x34   :  { %1423 = vmatpush.bf16.msra.mxu2 %v1267_v7  ;;  %1424 = vmatpush.bf16.msra.mxu3 %v1267_v7 }
  0x36   :  { %354 = vmatmul.bf16.vlgmr.msra.gmra.mxu0 %v1275_v8  ;;  %364 = vmatmul.bf16.vlgmr.msra.gmra.mxu1 %v1277_v9 }
  0x37   :  { %507 = vmatpush.bf16.msrb.mxu1 %v1274_v0  ;;  %374 = vmatmul.bf16.vlgmr.msra.gmra.mxu2 %v1279_v13 }
  0x38   :  { %384 = vmatmul.bf16.vlgmr.msra.gmra.mxu3 %v1281_v17  ;;  %859 = vmatpush.bf16.msrb.mxu2 %v1298_v18 }
  0x39   :  { %908 = vmatpush.bf16.msrb.mxu3 %v1306_v19  ;;  %957 = vmatpush.bf16.msrb.mxu0 %v1314_v38 }
  0x3b   :  { %508 = vmatpush.bf16.msrb.mxu1 %v1273_v1 }
  0x3c   :  { %860 = vmatpush.bf16.msrb.mxu2 %v1297_v20 }
  0x3d   :  { %909 = vmatpush.bf16.msrb.mxu3 %v1305_v21  ;;  %958 = vmatpush.bf16.msrb.mxu0 %v1313_v39 }
  0x3f   :  { %509 = vmatpush.bf16.msrb.mxu1 %v1272_v2 }
  0x40   :  { %861 = vmatpush.bf16.msrb.mxu2 %v1296_v22 }
  0x41   :  { %910 = vmatpush.bf16.msrb.mxu3 %v1304_v24  ;;  %959 = vmatpush.bf16.msrb.mxu0 %v1312_v41  ;;  %v1393_v24 = vld [vmem:[#allocation9 + $0x38] sm:$0xff]  }
  0x43   :  { %510 = vmatpush.bf16.msrb.mxu1 %v1271_v3  ;;  %v1390_v3 = vld [vmem:[#allocation9 + $0x20] sm:$0xff]  }
  0x44   :  { %862 = vmatpush.bf16.msrb.mxu2 %v1295_v26 }
  0x45   :  { %911 = vmatpush.bf16.msrb.mxu3 %v1303_v27  ;;  %960 = vmatpush.bf16.msrb.mxu0 %v1311_v42 }
  0x46   :  { %359 = vmatmul.bf16.gmra.mxu0 %v1276_v10  ;;  %369 = vmatmul.bf16.gmra.mxu1 %v1278_v11  ;;  %v1391_v10 = vld [vmem:[#allocation9 + $0x28] sm:$0xff]  }
  0x47   :  { %511 = vmatpush.bf16.msrb.mxu1 %v1270_v4  ;;  %379 = vmatmul.bf16.gmra.mxu2 %v1280_v15 }
  0x48   :  { %389 = vmatmul.bf16.gmra.mxu3 %v1282_v25  ;;  %863 = vmatpush.bf16.msrb.mxu2 %v1294_v28 }
  0x49   :  { %912 = vmatpush.bf16.msrb.mxu3 %v1302_v29  ;;  %961 = vmatpush.bf16.msrb.mxu0 %v1310_v44 }
  0x4b   :  { %512 = vmatpush.bf16.msrb.mxu1 %v1269_v5 }
  0x4c   :  { %864 = vmatpush.bf16.msrb.mxu2 %v1293_v30 }
  0x4d   :  { %913 = vmatpush.bf16.msrb.mxu3 %v1301_v31  ;;  %962 = vmatpush.bf16.msrb.mxu0 %v1309_v45 }
  0x4f   :  { %513 = vmatpush.bf16.msrb.mxu1 %v1268_v6 }
  0x50   :  { %865 = vmatpush.bf16.msrb.mxu2 %v1292_v33 }
  0x51   :  { %914 = vmatpush.bf16.msrb.mxu3 %v1300_v34  ;;  %963 = vmatpush.bf16.msrb.mxu0 %v1308_v49 }
  0x53   :  { %514 = vmatpush.bf16.msrb.mxu1 %v1267_v7 }
  0x54   :  { %866 = vmatpush.bf16.msrb.mxu2 %v1291_v35 }
  0x55   :  { %915 = vmatpush.bf16.msrb.mxu3 %v1299_v36  ;;  %964 = vmatpush.bf16.msrb.mxu0 %v1307_v50 }
  0x56   :  { %515 = vmatmul.bf16.vlgmr.msrb.gmra.mxu1 %v1283_v12 }
  0x57   :  { %867 = vmatmul.bf16.vlgmr.msrb.gmra.mxu2 %v1316_v37 }
  0x66   :  { %520 = vmatmul.bf16.gmra.mxu1 %v1284_v14 }
  0x67   :  { %872 = vmatmul.bf16.gmra.mxu2 %v1387_v43 }
  0x76   :  { %525 = vmatmul.bf16.gmra.mxu1 %v1285_v16  ;;  %v1392_v16 = vld [vmem:[#allocation9 + $0x30] sm:$0xff]  }
  0x77   :  { %877 = vmatmul.bf16.gmra.mxu2 %v1388_v53 }
  0x86   :  { %530 = vmatmul.bf16.gmra.mxu1 %v1286_v23 }
  0x87   :  { %882 = vmatmul.bf16.gmra.mxu2 %v1389_v60 }
  0x96   :  { %535 = vmatmul.bf16.gmra.mxu1 %v1287_v32 }
  0x97   :  { %887 = vmatmul.bf16.gmra.mxu2 %v1390_v3 }
  0xa6   :  { %540 = vmatmul.bf16.gmra.mxu1 %v1288_v40 }
  0xa7   :  { %892 = vmatmul.bf16.gmra.mxu2 %v1391_v10 }
  0xb3   :  { %v355_v47 = vpop.f32.mrf.mxu0  ;;  %v365_v48 = vpop.f32.mrf.mxu1 }
  0xb6   :  { %545 = vmatmul.bf16.gmra.mxu1 %v1289_v46 }
  0xb7   :  { %897 = vmatmul.bf16.gmra.mxu2 %v1392_v16 }
  0xba   :  { %v375_v4 = vpop.f32.mrf.mxu2 }
  0xbb   :  { %v357_v51 = vpop.f32.mrf.mxu0  ;;  %v367_v52 = vpop.f32.mrf.mxu1 }
  0xbc   :  { %v640_v54 = vpack.c.bf16 %v357_v51, %v355_v47  ;;  %v646_v0 = vpack.c.bf16 %v367_v52, %v365_v48  ;;  %v385_v18 = vpop.f32.mrf.mxu3  ;;  %v1662_v47 = vld [vmem:[%s1691_s5] ss:$0 sm:$0xff]  ;;  %s1593_s5 = smov [#allocation12]  }
  0xbd   :  { %s1058_s21 = sshll.u32 %s1593_s5, 4  ;;  %s1059_s21 = int_to_ptr.vmem [resolvable:$true] %s1058_s21 }
  0xbe   :  { %916 = vmatmul.bf16.vlgmr.msrb.gmra.mxu3 %v640_v54 }
  0xc2   :  { %v377_v9 = vpop.f32.mrf.mxu2 }
  0xc3   :  { %v360_v56 = vpop.f32.mrf.mxu0  ;;  %v370_v57 = vpop.f32.mrf.mxu1  ;;  %v652_v11 = vpack.c.bf16 %v377_v9, %v375_v4 }
  0xc4   :  { %v387_v23 = vpop.f32.mrf.mxu3 }
  0xc5   :  { %v658_v25 = vpack.c.bf16 %v387_v23, %v385_v18 }
  0xc6   :  { %550 = vmatmul.bf16.gmra.mxu1 %v1290_v55 }
  0xc7   :  { %902 = vmatmul.bf16.gmra.mxu2 %v1393_v24 }
  0xca   :  { %v380_v14 = vpop.f32.mrf.mxu2 }
  0xcb   :  { %v362_v58 = vpop.f32.mrf.mxu0  ;;  %v372_v59 = vpop.f32.mrf.mxu1 }
  0xcc   :  { %v643_v61 = vpack.c.bf16 %v362_v58, %v360_v56  ;;  %v649_v6 = vpack.c.bf16 %v372_v59, %v370_v57  ;;  %v390_v28 = vpop.f32.mrf.mxu3 }
  0xce   :  { %921 = vmatmul.bf16.gmra.mxu3 %v643_v61 }
  0xd2   :  { %v382_v17 = vpop.f32.mrf.mxu2 }
  0xd3   :  { %v516_v62 = vpop.f32.mrf.mxu1  ;;  %v655_v19 = vpack.c.bf16 %v382_v17, %v380_v14 }
  0xd4   :  { %v392_v30 = vpop.f32.mrf.mxu3 }
  0xd5   :  { %v661_v31 = vpack.c.bf16 %v392_v30, %v390_v28 }
  0xda   :  { %v868_v35 = vpop.f32.mrf.mxu2 }
  0xdb   :  { %v518_v63 = vpop.f32.mrf.mxu1  ;;  %v869_v50 = vadd.f32 %v1662_v47, %v868_v35 }
  0xdc   :  { %v641_v1 = vpack.c.bf16 %v518_v63, %v516_v62 }
  0xde   :  { %926 = vmatmul.bf16.gmra.mxu3 %v646_v0  ;;  %965 = vmatmul.bf16.vlgmr.msrb.gmra.mxu0 %v641_v1 }
  0xe2   :  { %v870_v39 = vpop.f32.mrf.mxu2 }
  0xe3   :  { %v521_v2 = vpop.f32.mrf.mxu1  ;;  %v871_v51 = vadd.f32 %v1662_v47, %v870_v39 }
  0xea   :  { %v873_v43 = vpop.f32.mrf.mxu2 }
  0xeb   :  { %v523_v5 = vpop.f32.mrf.mxu1  ;;  %v874_v0 = vadd.f32 %v1662_v47, %v873_v43 }
  0xec   :  { %v644_v7 = vpack.c.bf16 %v523_v5, %v521_v2 }
  0xee   :  { %931 = vmatmul.bf16.gmra.mxu3 %v649_v6  ;;  %970 = vmatmul.bf16.gmra.mxu0 %v644_v7 }
  0xf2   :  { %v875_v46 = vpop.f32.mrf.mxu2 }
  0xf3   :  { %v526_v8 = vpop.f32.mrf.mxu1  ;;  %v876_v2 = vadd.f32 %v1662_v47, %v875_v46 }
  0xfa   :  { %v878_v52 = vpop.f32.mrf.mxu2 }
  0xfb   :  { %v528_v12 = vpop.f32.mrf.mxu1  ;;  %v879_v14 = vadd.f32 %v1662_v47, %v878_v52 }
  0xfc   :  { %v647_v13 = vpack.c.bf16 %v528_v12, %v526_v8 }
  0xfe   :  { %975 = vmatmul.bf16.gmra.mxu0 %v647_v13  ;;  %936 = vmatmul.bf16.gmra.mxu3 %v652_v11 }
 0x102   :  { %v880_v62 = vpop.f32.mrf.mxu2 }
 0x103   :  { %v531_v15 = vpop.f32.mrf.mxu1  ;;  %v881_v16 = vadd.f32 %v1662_v47, %v880_v62 }
 0x10a   :  { %v883_v6 = vpop.f32.mrf.mxu2 }
 0x10b   :  { %v533_v20 = vpop.f32.mrf.mxu1 }
 0x10c   :  { %v650_v21 = vpack.c.bf16 %v533_v20, %v531_v15 }
 0x10e   :  { %980 = vmatmul.bf16.gmra.mxu0 %v650_v21  ;;  %941 = vmatmul.bf16.gmra.mxu3 %v655_v19 }
 0x112   :  { %v885_v15 = vpop.f32.mrf.mxu2 }
 0x113   :  { %v536_v22 = vpop.f32.mrf.mxu1  ;;  %v886_v30 = vadd.f32 %v1662_v47, %v885_v15 }
 0x11a   :  { %v888_v23 = vpop.f32.mrf.mxu2 }
 0x11b   :  { %v538_v26 = vpop.f32.mrf.mxu1  ;;  %v889_v43 = vadd.f32 %v1662_v47, %v888_v23 }
 0x11c   :  { %v653_v27 = vpack.c.bf16 %v538_v26, %v536_v22 }
 0x11e   :  { %985 = vmatmul.bf16.gmra.mxu0 %v653_v27  ;;  %946 = vmatmul.bf16.gmra.mxu3 %v658_v25 }
 0x123   :  { %v541_v29 = vpop.f32.mrf.mxu1 }
 0x12b   :  { %v543_v32 = vpop.f32.mrf.mxu1 }
 0x12c   :  { %v656_v33 = vpack.c.bf16 %v543_v32, %v541_v29  ;;  %v884_v29 = vadd.f32 %v1662_v47, %v883_v6 }
 0x12e   :  { %990 = vmatmul.bf16.gmra.mxu0 %v656_v33  ;;  %951 = vmatmul.bf16.gmra.mxu3 %v661_v31  ;;  %v890_v31 = vpop.f32.mrf.mxu2 }
 0x133   :  { %v546_v34 = vpop.f32.mrf.mxu1 }
 0x13b   :  { %v548_v36 = vpop.f32.mrf.mxu1 }
 0x13c   :  { %v659_v37 = vpack.c.bf16 %v548_v36, %v546_v34 }
 0x13e   :  { %995 = vmatmul.bf16.gmra.mxu0 %v659_v37 }
 0x141   :  { %v917_v38 = vpop.f32.mrf.mxu3 }
 0x142   :  { %v918_v53 = vadd.f32 %v917_v38, %v869_v50 }
 0x143   :  { %v551_v40 = vpop.f32.mrf.mxu1 }
 0x149   :  { %v919_v41 = vpop.f32.mrf.mxu3 }
 0x14a   :  { %v920_v54 = vadd.f32 %v919_v41, %v871_v51  ;;  %v893_v41 = vpop.f32.mrf.mxu2 }
 0x14b   :  { %v553_v42 = vpop.f32.mrf.mxu1 }
 0x14c   :  { %v662_v44 = vpack.c.bf16 %v553_v42, %v551_v40 }
 0x14e   :  { %1000 = vmatmul.bf16.gmra.mxu0 %v662_v44 }
 0x151   :  { %v922_v45 = vpop.f32.mrf.mxu3 }
 0x152   :  { %v923_v3 = vadd.f32 %v922_v45, %v874_v0  ;;  %v891_v45 = vadd.f32 %v1662_v47, %v890_v31  ;;  %v895_v50 = vpop.f32.mrf.mxu2 }
 0x159   :  { %v924_v48 = vpop.f32.mrf.mxu3 }
 0x15a   :  { %v925_v4 = vadd.f32 %v924_v48, %v876_v2 }
 0x15b   :  { %v966_v49 = vpop.f32.mrf.mxu0 }
 0x15c   :  { %v967_v55 = vadd.f32 %v966_v49, %v918_v53 }
 0x15e   :  { %v1006_v59 = vmax.f32 %v967_v55, 0.0 }
 0x161   :  { %v927_v56 = vpop.f32.mrf.mxu3 }
 0x162   :  { %v928_v17 = vadd.f32 %v927_v56, %v879_v14 }
 0x163   :  { %v968_v57 = vpop.f32.mrf.mxu0 }
 0x164   :  { %v969_v58 = vadd.f32 %v968_v57, %v920_v54 }
 0x166   :  { %v1007_v60 = vmax.f32 %v969_v58, 0.0  ;;  %v894_v58 = vadd.f32 %v1662_v47, %v893_v41 }
 0x168   :  { %v1350_v61 = vpack.c.bf16 %v1007_v60, %v1006_v59  ;;  %v898_v59 = vpop.f32.mrf.mxu2  ;;  %v896_v60 = vadd.f32 %v1662_v47, %v895_v50 }
 0x169   :  { %v929_v1 = vpop.f32.mrf.mxu3 }
 0x16a   :  { %1351 = vst [vmem:[#allocation12] sm:$0xff] %v1350_v61   ;;  %v930_v19 = vadd.f32 %v929_v1, %v881_v16 }
 0x16b   :  { %v971_v63 = vpop.f32.mrf.mxu0 }
 0x16c   :  { %v972_v5 = vadd.f32 %v971_v63, %v923_v3 }
 0x16e   :  { %v1008_v9 = vmax.f32 %v972_v5, 0.0 }
 0x170   :  { %v900_v5 = vpop.f32.mrf.mxu2 }
 0x171   :  { %v932_v11 = vpop.f32.mrf.mxu3 }
 0x172   :  { %v933_v32 = vadd.f32 %v932_v11, %v884_v29 }
 0x173   :  { %v973_v7 = vpop.f32.mrf.mxu0 }
 0x174   :  { %v974_v8 = vadd.f32 %v973_v7, %v925_v4 }
 0x176   :  { %v1009_v10 = vmax.f32 %v974_v8, 0.0 }
 0x178   :  { %v1355_v12 = vpack.c.bf16 %v1009_v10, %v1008_v9  ;;  %v899_v9 = vadd.f32 %v1662_v47, %v898_v59  ;;  %v901_v10 = vadd.f32 %v1662_v47, %v900_v5 }
 0x179   :  { %v934_v18 = vpop.f32.mrf.mxu3 }
 0x17a   :  { %1394 = vst [vmem:[#allocation12 + $0x8] sm:$0xff] %v1355_v12   ;;  %v935_v33 = vadd.f32 %v934_v18, %v886_v30  ;;  %v903_v12 = vpop.f32.mrf.mxu2 }
 0x17b   :  { %v976_v13 = vpop.f32.mrf.mxu0  ;;  %v904_v23 = vadd.f32 %v1662_v47, %v903_v12 }
 0x17c   :  { %v977_v20 = vadd.f32 %v976_v13, %v928_v17 }
 0x17e   :  { %v1010_v24 = vmax.f32 %v977_v20, 0.0 }
 0x181   :  { %v937_v27 = vpop.f32.mrf.mxu3 }
 0x182   :  { %v938_v46 = vadd.f32 %v937_v27, %v889_v43 }
 0x183   :  { %v978_v21 = vpop.f32.mrf.mxu0 }
 0x184   :  { %v979_v22 = vadd.f32 %v978_v21, %v930_v19  ;;  %v905_v21 = vpop.f32.mrf.mxu2 }
 0x186   :  { %v1011_v25 = vmax.f32 %v979_v22, 0.0 }
 0x188   :  { %v1360_v26 = vpack.c.bf16 %v1011_v25, %v1010_v24  ;;  %v906_v24 = vadd.f32 %v1662_v47, %v905_v21 }
 0x189   :  { %v939_v35 = vpop.f32.mrf.mxu3 }
 0x18a   :  { %1395 = vst [vmem:[#allocation12 + $0x10] sm:$0xff] %v1360_v26   ;;  %v940_v48 = vadd.f32 %v939_v35, %v891_v45 }
 0x18b   :  { %v981_v28 = vpop.f32.mrf.mxu0 }
 0x18c   :  { %v982_v34 = vadd.f32 %v981_v28, %v933_v32 }
 0x18e   :  { %v1012_v38 = vmax.f32 %v982_v34, 0.0 }
 0x191   :  { %v942_v44 = vpop.f32.mrf.mxu3 }
 0x192   :  { %v943_v61 = vadd.f32 %v942_v44, %v894_v58 }
 0x193   :  { %v983_v36 = vpop.f32.mrf.mxu0 }
 0x194   :  { %v984_v37 = vadd.f32 %v983_v36, %v935_v33 }
 0x196   :  { %v1013_v39 = vmax.f32 %v984_v37, 0.0 }
 0x198   :  { %v1365_v40 = vpack.c.bf16 %v1013_v39, %v1012_v38 }
 0x199   :  { %v944_v55 = vpop.f32.mrf.mxu3 }
 0x19a   :  { %1396 = vst [vmem:[#allocation12 + $0x18] sm:$0xff] %v1365_v40   ;;  %v945_v63 = vadd.f32 %v944_v55, %v896_v60 }
 0x19b   :  { %v986_v42 = vpop.f32.mrf.mxu0 }
 0x19c   :  { %v987_v49 = vadd.f32 %v986_v42, %v938_v46 }
 0x19e   :  { %v1014_v53 = vmax.f32 %v987_v49, 0.0 }
 0x1a1   :  { %v947_v62 = vpop.f32.mrf.mxu3 }
 0x1a2   :  { %v948_v11 = vadd.f32 %v947_v62, %v899_v9 }
 0x1a3   :  { %v988_v51 = vpop.f32.mrf.mxu0 }
 0x1a4   :  { %v989_v52 = vadd.f32 %v988_v51, %v940_v48 }
 0x1a6   :  { %v1015_v54 = vmax.f32 %v989_v52, 0.0 }
 0x1a8   :  { %v1370_v56 = vpack.c.bf16 %v1015_v54, %v1014_v53 }
 0x1a9   :  { %v949_v7 = vpop.f32.mrf.mxu3 }
 0x1aa   :  { %1397 = vst [vmem:[#allocation12 + $0x20] sm:$0xff] %v1370_v56   ;;  %v950_v13 = vadd.f32 %v949_v7, %v901_v10 }
 0x1ab   :  { %v991_v57 = vpop.f32.mrf.mxu0 }
 0x1ac   :  { %v992_v0 = vadd.f32 %v991_v57, %v943_v61 }
 0x1ae   :  { %v1016_v3 = vmax.f32 %v992_v0, 0.0 }
 0x1b1   :  { %v952_v17 = vpop.f32.mrf.mxu3 }
 0x1b2   :  { %v953_v26 = vadd.f32 %v952_v17, %v904_v23 }
 0x1b3   :  { %v993_v1 = vpop.f32.mrf.mxu0 }
 0x1b4   :  { %v994_v2 = vadd.f32 %v993_v1, %v945_v63 }
 0x1b6   :  { %v1017_v4 = vmax.f32 %v994_v2, 0.0 }
 0x1b8   :  { %v1375_v6 = vpack.c.bf16 %v1017_v4, %v1016_v3 }
 0x1b9   :  { %v954_v25 = vpop.f32.mrf.mxu3 }
 0x1ba   :  { %1398 = vst [vmem:[#allocation12 + $0x28] sm:$0xff] %v1375_v6   ;;  %v955_v27 = vadd.f32 %v954_v25, %v906_v24 }
 0x1bb   :  { %v996_v8 = vpop.f32.mrf.mxu0 }
 0x1bc   :  { %v997_v14 = vadd.f32 %v996_v8, %v948_v11 }
 0x1be   :  { %v1018_v18 = vmax.f32 %v997_v14, 0.0 }
 0x1c3   :  { %v998_v15 = vpop.f32.mrf.mxu0 }
 0x1c4   :  { %v999_v16 = vadd.f32 %v998_v15, %v950_v13 }
 0x1c6   :  { %v1019_v19 = vmax.f32 %v999_v16, 0.0 }
 0x1c8   :  { %v1380_v20 = vpack.c.bf16 %v1019_v19, %v1018_v18 }
 0x1ca   :  { %1399 = vst [vmem:[#allocation12 + $0x30] sm:$0xff] %v1380_v20  }
 0x1cb   :  { %v1001_v22 = vpop.f32.mrf.mxu0 }
 0x1cc   :  { %v1002_v28 = vadd.f32 %v1001_v22, %v953_v26 }
 0x1ce   :  { %v1020_v31 = vmax.f32 %v1002_v28, 0.0 }
 0x1d3   :  { %v1003_v29 = vpop.f32.mrf.mxu0 }
 0x1d4   :  { %v1004_v30 = vadd.f32 %v1003_v29, %v955_v27 }
 0x1d6   :  { %v1021_v32 = vmax.f32 %v1004_v30, 0.0 }
 0x1d8   :  { %v1385_v33 = vpack.c.bf16 %v1021_v32, %v1020_v31 }
 0x1da   :  { %1400 = vst [vmem:[#allocation12 + $0x38] sm:$0xff] %v1385_v33  }
 0x1db   :  { %1066 = dma.vmem_to_hbm [thread:$0]  %s1059_s21, 1024, %s1061_s24, [#allocation5], %s1587_s29, %s1587_s29, %s1588_s30  }
 0x1dc   :  { %1584 = dma.done.wait [#allocation5], 1024  }
 0x1dd   :  { %1585 = vsyncadd [#allocation5], 4294966272 }
 0x1de   :  { %1071 = vsyncpa [#allocation4], 1 }
 0x1df   :  { %1072 = vsyncpa [#allocation7], 1 }
 0x1e0   :  { %1073 = vsyncpa [#allocation10], 1 }
 0x1e1   :  { %1074 = vsyncpa [#allocation5], 1 }

</bundles_post_ra>
